<compile_context>
chip_gen: v6e
topology: v6e:2x2x1
jax: 0.10.0
libtpu: 0.0.40
codegen_flags: <defaults>
</compile_context>

<pallas_src>
import functools

import jax
import jax.numpy as jnp
from jax.experimental import pallas as pl
from jax.experimental.pallas import tpu as pltpu


def _round_up(x, m):
    return ((x + m - 1) // m) * m


def _fused_mlp_kernel(*refs, num_gelu_layers: int, n_linear: int):
    """One row-tile of the full MLP: chained bf16 matmuls (f32 acc) + f32 bias/GELU."""
    x_ref = refs[0]
    wb_refs = refs[1:1 + 2 * n_linear]
    o_ref = refs[1 + 2 * n_linear]

    inv_sqrt2 = jnp.float32(0.7071067811865476)
    h = x_ref[...].astype(jnp.bfloat16)  # bf16 MXU operand
    for li in range(n_linear):
        w = wb_refs[2 * li][...]                         # bf16, padded to lane multiple
        b = wb_refs[2 * li + 1][...].astype(jnp.float32)  # (1, N) f32, broadcasts over rows
        hf = jnp.dot(h, w, preferred_element_type=jnp.float32) + b
        if li < num_gelu_layers:
            # nn.GELU() default (approximate='none'): 0.5 * x * (1 + erf(x / sqrt(2)))
            hf = 0.5 * hf * (1.0 + jax.lax.erf(hf * inv_sqrt2))
        # Only downcast when feeding another MXU matmul; final output stays f32.
        h = hf.astype(jnp.bfloat16) if li + 1 < n_linear else hf
    o_ref[...] = h.astype(o_ref.dtype)


def _vmem_budget_bytes():
    """Generation-aware VMEM budget with ~25% headroom for compiler scratch."""
    cap = 128 * 1024 * 1024
    try:
        info = pltpu.get_tpu_info()
        cap = int(getattr(info, "vmem_capacity_bytes", cap))
    except Exception:
        pass
    return min(int(0.75 * cap), 100 * 1024 * 1024)


def _pad_params(params, d_in):
    """Zero-pad every layer's output width to a multiple of 128; weights -> bf16.

    Padded hidden channels are exactly zero (zero cols + zero bias, GELU(0)=0) and the
    padded rows of the next weight are zero, so numerics are unchanged.
    """
    padded = []
    d_prev, d_prev_pad = d_in, d_in  # input feature dim is left unpadded (block == full dim)
    for (w, b) in params:
        k, n = w.shape
        assert k == d_prev, (k, d_prev)
        n_pad = _round_up(n, 128)
        w_p = jnp.zeros((d_prev_pad, n_pad), jnp.bfloat16)
        w_p = w_p.at[:k, :n].set(w.astype(jnp.bfloat16))
        b_p = jnp.zeros((1, n_pad), jnp.float32)
        b_p = b_p.at[0, :n].set(b.astype(jnp.float32))
        padded.append((w_p, b_p))
        d_prev, d_prev_pad = n, n_pad
    return padded


def mlp_forward(x, params, num_layers, add_linear_last):
    """x: (..., D_in). Applies num_layers of (Linear->GELU), then optional Linear.

    Single fused pallas_call; 1-D "parallel" grid over row tiles of the flattened
    leading dims; all (padded, bf16) weights stay VMEM-resident across grid steps.
    """
    lead_shape = x.shape[:-1]
    d_in = x.shape[-1]
    h2d = x.reshape(-1, d_in)
    M = h2d.shape[0]

    n_linear = num_layers + (1 if add_linear_last else 0)
    assert len(params) == n_linear
    n_out = params[-1][0].shape[1]

    padded_params = _pad_params(params, d_in)
    n_out_pad = padded_params[-1][0].shape[1]
    max_width_pad = max(w.shape[1] for w, _ in padded_params)

    vmem_budget = _vmem_budget_bytes()
    weight_bytes = sum(int(w.size) * 2 + int(b.size) * 4 for w, b in padded_params)
    if 2 * weight_bytes > vmem_budget:
        # TODO(synk): K/N-tiled fallback (extra "arbitrary" grid axis + VMEM accumulator)
        # so the fused MLP scales past weights that fit fully in VMEM.
        raise NotImplementedError("MLP weights too large for VMEM-resident fused kernel.")

    # ---- Row-tile selection (balanced, >=2 steps for megacore when M is big enough) ----
    per_row_bytes = 2 * d_in * 4 + 2 * n_out_pad * 4 + max_width_pad * 8  # in/out dbl-buf + intermediates
    avail = max(vmem_budget - 2 * weight_bytes - (8 << 20), 4 << 20)
    tm_cap = max(8, min(2048, (avail // per_row_bytes) // 8 * 8))

    if M >= 256 or M > tm_cap:
        steps = max(2, pl.cdiv(M, tm_cap))            # >=2 steps so both v7x TCs get work
        tm = min(tm_cap, _round_up(pl.cdiv(M, steps), 8))
        steps = pl.cdiv(M, tm)
    else:
        tm = _round_up(max(M, 1), 8)                  # tiny input: per-step overhead dominates
        steps = 1
    m_pad = steps * tm
    if m_pad != M:
        h2d = jnp.pad(h2d, ((0, m_pad - M), (0, 0)))
    grid = (steps,)

    # ---- VMEM limit & advisory cost estimate ----
    act_bytes = 2 * tm * d_in * 4 + 2 * tm * n_out_pad * 4
    vmem_limit = int(min(vmem_budget,
                         max(32 * 1024 * 1024,
                             int(1.5 * (2 * weight_bytes + act_bytes + tm * max_width_pad * 8)))))

    flops = 0
    transcendentals = 0
    d_prev = d_in
    for li, (w_p, _) in enumerate(padded_params):
        flops += 2 * m_pad * d_prev * w_p.shape[1]
        if li < num_layers:
            transcendentals += m_pad * w_p.shape[1]
        d_prev = w_p.shape[1]
    bytes_accessed = m_pad * d_in * 4 + m_pad * n_out_pad * 4 + weight_bytes
    cost = pl.CostEstimate(flops=flops, transcendentals=transcendentals,
                           bytes_accessed=bytes_accessed)

    kernel = functools.partial(_fused_mlp_kernel,
                               num_gelu_layers=num_layers,
                               n_linear=n_linear)
    out_specs = pl.BlockSpec((tm, n_out_pad), lambda i: (i, 0))
    out_shape = jax.ShapeDtypeStruct((m_pad, n_out_pad), x.dtype)

    def _run(wb_pipeline_mode):
        flat_inputs = [h2d]
        in_specs = [pl.BlockSpec((tm, d_in), lambda i: (i, 0))]
        extra = {} if wb_pipeline_mode is None else {"pipeline_mode": wb_pipeline_mode}
        for w_p, b_p in padded_params:
            flat_inputs.append(w_p)
            in_specs.append(pl.BlockSpec(w_p.shape, lambda i: (0, 0), **extra))
            flat_inputs.append(b_p)
            in_specs.append(pl.BlockSpec(b_p.shape, lambda i: (0, 0), **extra))
        out = pl.pallas_call(
            kernel,
            out_shape=out_shape,
            grid=grid,
            in_specs=in_specs,
            out_specs=out_specs,
            compiler_params=pltpu.CompilerParams(
                dimension_semantics=("parallel",),
                vmem_limit_bytes=vmem_limit,
            ),
            cost_estimate=cost,
        )(*flat_inputs)
        return jax.block_until_ready(out)

    try:
        # Weights/biases never change across grid steps -> single buffer saves VMEM.
        out = _run(pl.Buffered(1))
    except Exception:
        # Fallback to default double-buffered pipelining if Buffered(1) is unsupported.
        out = _run(None)

    out = out[:M, :n_out]
    return out.reshape(*lead_shape, n_out)


def init_mlp_params(key, in_features, hidden_dim, num_layers, add_linear_last):
    """Deterministic synthetic init (shapes match nn.LazyLinear(hidden_dim)).

    Weights are stored (D_in, D_out) so the kernel hot path is x @ W on the MXU
    (equivalent to PyTorch's x @ weight.T with weight (out, in)).
    """
    params = []
    d_in = in_features
    n_linear = num_layers + (1 if add_linear_last else 0)
    keys = jax.random.split(key, 2 * n_linear)
    for i in range(n_linear):
        kw, kb = keys[2 * i], keys[2 * i + 1]
        scale = 1.0 / jnp.sqrt(jnp.float32(d_in))
        w = jax.random.uniform(kw, (d_in, hidden_dim), jnp.float32, -scale, scale)
        b = jax.random.uniform(kb, (hidden_dim,), jnp.float32, -scale, scale)
        params.append((w, b))
        d_in = hidden_dim
    return params


def mlp_reference(x, params, num_layers, add_linear_last, *, bf16_matmul=False):
    """Pure-JAX reference. bf16_matmul=True mirrors the kernel's MXU operand dtype."""
    inv_sqrt2 = jnp.float32(0.7071067811865476)

    def dot(a, w):
        if bf16_matmul:
            return jnp.dot(a.astype(jnp.bfloat16), w.astype(jnp.bfloat16),
                           preferred_element_type=jnp.float32)
        return jnp.dot(a, w, preferred_element_type=jnp.float32)

    h = x.astype(jnp.float32)
    idx = 0
    for _ in range(num_layers):
        w, b = params[idx]
        idx += 1
        h = dot(h, w) + b
        h = 0.5 * h * (1.0 + jax.lax.erf(h * inv_sqrt2))
    if add_linear_last:
        w, b = params[idx]
        h = dot(h, w) + b
    return h


if __name__ == "__main__":
    # Module config
    hidden_dim = 32
    num_layers = 2
    add_linear_last = True
    dropout_rate = 0.0  # rate == 0 -> no Dropout layer is constructed (matches MLP.__init__)

    # Small input consistent with an MLP over a (batch, seq, features) tensor
    batch, seq, in_features = 2, 8, 16

    key = jax.random.PRNGKey(0)
    kx, kp = jax.random.split(key)
    x = jax.random.normal(kx, (batch, seq, in_features), dtype=jnp.float32)
    params = init_mlp_params(kp, in_features, hidden_dim, num_layers, add_linear_last)

    out = mlp_forward(x, params, num_layers, add_linear_last)
    out = jax.block_until_ready(out)
    assert out.shape == (batch, seq, hidden_dim), out.shape

    # Check against a reference with matching MXU operand dtype (bf16 in, f32 acc) ...
    ref_mxu = mlp_reference(x, params, num_layers, add_linear_last, bf16_matmul=True)
    assert jnp.allclose(out, ref_mxu, atol=2e-2, rtol=2e-2), \
        float(jnp.max(jnp.abs(out - ref_mxu)))
    # ... and against the pure-f32 module semantics with a tolerance sized for bf16 operands.
    ref_f32 = mlp_reference(x, params, num_layers, add_linear_last, bf16_matmul=False)
    assert jnp.allclose(out, ref_f32, atol=1e-1, rtol=1e-1), \
        float(jnp.max(jnp.abs(out - ref_f32)))

    print("KERNEL_OK")
</pallas_src>

<mosaic_0001>
module attributes {stable_mosaic.version = 11 : i64} {
  func.func @_fused_mlp_kernel(%arg0: i32, %arg1: memref<16x16xf32, #tpu.memory_space<vmem>>, %arg2: memref<16x128xbf16, #tpu.memory_space<vmem>>, %arg3: memref<1x128xf32, #tpu.memory_space<vmem>>, %arg4: memref<128x128xbf16, #tpu.memory_space<vmem>>, %arg5: memref<1x128xf32, #tpu.memory_space<vmem>>, %arg6: memref<128x128xbf16, #tpu.memory_space<vmem>>, %arg7: memref<1x128xf32, #tpu.memory_space<vmem>>, %arg8: memref<16x128xf32, #tpu.memory_space<vmem>>) attributes {dimension_semantics = [#tpu.dimension_semantics<parallel>], iteration_bounds = array<i64: 1>, scalar_prefetch = 0 : i64, scratch_operands = 0 : i64, tpu.core_type = #tpu.core_type<tc>, window_params = [{transform_indices = @transform_0, window_bounds = array<i64: 16, 16>}, {pipeline_mode = #tpu.pipeline_mode<synchronous>, transform_indices = @transform_1, window_bounds = array<i64: 16, 128>}, {pipeline_mode = #tpu.pipeline_mode<synchronous>, transform_indices = @transform_2, window_bounds = array<i64: 1, 128>}, {pipeline_mode = #tpu.pipeline_mode<synchronous>, transform_indices = @transform_3, window_bounds = array<i64: 128, 128>}, {pipeline_mode = #tpu.pipeline_mode<synchronous>, transform_indices = @transform_4, window_bounds = array<i64: 1, 128>}, {pipeline_mode = #tpu.pipeline_mode<synchronous>, transform_indices = @transform_5, window_bounds = array<i64: 128, 128>}, {pipeline_mode = #tpu.pipeline_mode<synchronous>, transform_indices = @transform_6, window_bounds = array<i64: 1, 128>}, {transform_indices = @transform_7, window_bounds = array<i64: 16, 128>}]} {
    %c0 = arith.constant 0 : index
    %c0_0 = arith.constant 0 : index
    %0 = vector.load %arg1[%c0, %c0_0] : memref<16x16xf32, #tpu.memory_space<vmem>>, vector<16x16xf32>
    %1 = arith.truncf %0 : vector<16x16xf32> to vector<16x16xbf16>
    %c0_1 = arith.constant 0 : index
    %c0_2 = arith.constant 0 : index
    %2 = vector.load %arg2[%c0_1, %c0_2] : memref<16x128xbf16, #tpu.memory_space<vmem>>, vector<16x128xbf16>
    %c0_3 = arith.constant 0 : index
    %c0_4 = arith.constant 0 : index
    %3 = vector.load %arg3[%c0_3, %c0_4] : memref<1x128xf32, #tpu.memory_space<vmem>>, vector<1x128xf32>
    %cst = arith.constant dense<0.000000e+00> : vector<16x128xf32>
    %4 = tpu.matmul %1, %2, %cst {dimension_numbers = #tpu.dot_dimension_numbers<[1], [0], [0], [1], [0, 0, 1, 1], [], []>} : vector<16x16xbf16>, vector<16x128xbf16>, vector<16x128xf32> -> vector<16x128xf32>
    %5 = vector.broadcast %3 : vector<1x128xf32> to vector<16x128xf32>
    %6 = arith.addf %4, %5 : vector<16x128xf32>
    %cst_5 = arith.constant 5.000000e-01 : f32
    %7 = vector.broadcast %cst_5 : f32 to vector<16x128xf32>
    %8 = arith.mulf %7, %6 : vector<16x128xf32>
    %cst_6 = arith.constant 0.707106769 : f32
    %9 = vector.broadcast %cst_6 : f32 to vector<16x128xf32>
    %10 = arith.mulf %6, %9 : vector<16x128xf32>
    %11 = math.erf %10 : vector<16x128xf32>
    %cst_7 = arith.constant 1.000000e+00 : f32
    %12 = vector.broadcast %cst_7 : f32 to vector<16x128xf32>
    %13 = arith.addf %12, %11 : vector<16x128xf32>
    %14 = arith.mulf %8, %13 : vector<16x128xf32>
    %15 = arith.truncf %14 : vector<16x128xf32> to vector<16x128xbf16>
    %c0_8 = arith.constant 0 : index
    %c0_9 = arith.constant 0 : index
    %16 = vector.load %arg4[%c0_8, %c0_9] : memref<128x128xbf16, #tpu.memory_space<vmem>>, vector<128x128xbf16>
    %c0_10 = arith.constant 0 : index
    %c0_11 = arith.constant 0 : index
    %17 = vector.load %arg5[%c0_10, %c0_11] : memref<1x128xf32, #tpu.memory_space<vmem>>, vector<1x128xf32>
    %cst_12 = arith.constant dense<0.000000e+00> : vector<16x128xf32>
    %18 = tpu.matmul %15, %16, %cst_12 {dimension_numbers = #tpu.dot_dimension_numbers<[1], [0], [0], [1], [0, 0, 1, 1], [], []>} : vector<16x128xbf16>, vector<128x128xbf16>, vector<16x128xf32> -> vector<16x128xf32>
    %19 = vector.broadcast %17 : vector<1x128xf32> to vector<16x128xf32>
    %20 = arith.addf %18, %19 : vector<16x128xf32>
    %cst_13 = arith.constant 5.000000e-01 : f32
    %21 = vector.broadcast %cst_13 : f32 to vector<16x128xf32>
    %22 = arith.mulf %21, %20 : vector<16x128xf32>
    %cst_14 = arith.constant 0.707106769 : f32
    %23 = vector.broadcast %cst_14 : f32 to vector<16x128xf32>
    %24 = arith.mulf %20, %23 : vector<16x128xf32>
    %25 = math.erf %24 : vector<16x128xf32>
    %cst_15 = arith.constant 1.000000e+00 : f32
    %26 = vector.broadcast %cst_15 : f32 to vector<16x128xf32>
    %27 = arith.addf %26, %25 : vector<16x128xf32>
    %28 = arith.mulf %22, %27 : vector<16x128xf32>
    %29 = arith.truncf %28 : vector<16x128xf32> to vector<16x128xbf16>
    %c0_16 = arith.constant 0 : index
    %c0_17 = arith.constant 0 : index
    %30 = vector.load %arg6[%c0_16, %c0_17] : memref<128x128xbf16, #tpu.memory_space<vmem>>, vector<128x128xbf16>
    %c0_18 = arith.constant 0 : index
    %c0_19 = arith.constant 0 : index
    %31 = vector.load %arg7[%c0_18, %c0_19] : memref<1x128xf32, #tpu.memory_space<vmem>>, vector<1x128xf32>
    %cst_20 = arith.constant dense<0.000000e+00> : vector<16x128xf32>
    %32 = tpu.matmul %29, %30, %cst_20 {dimension_numbers = #tpu.dot_dimension_numbers<[1], [0], [0], [1], [0, 0, 1, 1], [], []>} : vector<16x128xbf16>, vector<128x128xbf16>, vector<16x128xf32> -> vector<16x128xf32>
    %33 = vector.broadcast %31 : vector<1x128xf32> to vector<16x128xf32>
    %34 = arith.addf %32, %33 : vector<16x128xf32>
    %c0_21 = arith.constant 0 : index
    %c0_22 = arith.constant 0 : index
    %35 = vector.load %arg8[%c0_21, %c0_22] : memref<16x128xf32, #tpu.memory_space<vmem>>, vector<16x128xf32>
    tpu.vector_store %arg8[%c0_21, %c0_22], %34 {strides = array<i32>} : memref<16x128xf32, #tpu.memory_space<vmem>>, vector<16x128xf32>,
    return
  }
  func.func @transform_0(%arg0: i32) -> (i32, i32) {
    %c0_i32 = arith.constant 0 : i32
    %c0_i32_0 = arith.constant 0 : i32
    return %arg0, %c0_i32 : i32, i32
  }
  func.func @transform_1(%arg0: i32) -> (i32, i32) {
    %c0_i32 = arith.constant 0 : i32
    %c0_i32_0 = arith.constant 0 : i32
    %c0_i32_1 = arith.constant 0 : i32
    return %c0_i32, %c0_i32_0 : i32, i32
  }
  func.func @transform_2(%arg0: i32) -> (i32, i32) {
    %c0_i32 = arith.constant 0 : i32
    %c0_i32_0 = arith.constant 0 : i32
    %c0_i32_1 = arith.constant 0 : i32
    return %c0_i32, %c0_i32_0 : i32, i32
  }
  func.func @transform_3(%arg0: i32) -> (i32, i32) {
    %c0_i32 = arith.constant 0 : i32
    %c0_i32_0 = arith.constant 0 : i32
    %c0_i32_1 = arith.constant 0 : i32
    return %c0_i32, %c0_i32_0 : i32, i32
  }
  func.func @transform_4(%arg0: i32) -> (i32, i32) {
    %c0_i32 = arith.constant 0 : i32
    %c0_i32_0 = arith.constant 0 : i32
    %c0_i32_1 = arith.constant 0 : i32
    return %c0_i32, %c0_i32_0 : i32, i32
  }
  func.func @transform_5(%arg0: i32) -> (i32, i32) {
    %c0_i32 = arith.constant 0 : i32
    %c0_i32_0 = arith.constant 0 : i32
    %c0_i32_1 = arith.constant 0 : i32
    return %c0_i32, %c0_i32_0 : i32, i32
  }
  func.func @transform_6(%arg0: i32) -> (i32, i32) {
    %c0_i32 = arith.constant 0 : i32
    %c0_i32_0 = arith.constant 0 : i32
    %c0_i32_1 = arith.constant 0 : i32
    return %c0_i32, %c0_i32_0 : i32, i32
  }
  func.func @transform_7(%arg0: i32) -> (i32, i32) {
    %c0_i32 = arith.constant 0 : i32
    %c0_i32_0 = arith.constant 0 : i32
    return %arg0, %c0_i32 : i32, i32
  }
}

module attributes {stable_mosaic.version = 11 : i64} {
  func.func @_fused_mlp_kernel(%arg0: i32, %arg1: memref<16x16xf32, #tpu.memory_space<vmem>>, %arg2: memref<16x128xbf16, #tpu.memory_space<vmem>>, %arg3: memref<1x128xf32, #tpu.memory_space<vmem>>, %arg4: memref<128x128xbf16, #tpu.memory_space<vmem>>, %arg5: memref<1x128xf32, #tpu.memory_space<vmem>>, %arg6: memref<128x128xbf16, #tpu.memory_space<vmem>>, %arg7: memref<1x128xf32, #tpu.memory_space<vmem>>, %arg8: memref<16x128xf32, #tpu.memory_space<vmem>>) attributes {dimension_semantics = [#tpu.dimension_semantics<parallel>], iteration_bounds = array<i64: 1>, scalar_prefetch = 0 : i64, scratch_operands = 0 : i64, tpu.core_type = #tpu.core_type<tc>, window_params = [{transform_indices = @transform_0, window_bounds = array<i64: 16, 16>}, {pipeline_mode = #tpu.pipeline_mode<synchronous>, transform_indices = @transform_1, window_bounds = array<i64: 16, 128>}, {pipeline_mode = #tpu.pipeline_mode<synchronous>, transform_indices = @transform_2, window_bounds = array<i64: 1, 128>}, {pipeline_mode = #tpu.pipeline_mode<synchronous>, transform_indices = @transform_3, window_bounds = array<i64: 128, 128>}, {pipeline_mode = #tpu.pipeline_mode<synchronous>, transform_indices = @transform_4, window_bounds = array<i64: 1, 128>}, {pipeline_mode = #tpu.pipeline_mode<synchronous>, transform_indices = @transform_5, window_bounds = array<i64: 128, 128>}, {pipeline_mode = #tpu.pipeline_mode<synchronous>, transform_indices = @transform_6, window_bounds = array<i64: 1, 128>}, {transform_indices = @transform_7, window_bounds = array<i64: 16, 128>}]} {
    %c0 = arith.constant 0 : index
    %c0_0 = arith.constant 0 : index
    %0 = vector.load %arg1[%c0, %c0_0] : memref<16x16xf32, #tpu.memory_space<vmem>>, vector<16x16xf32>
    %1 = arith.truncf %0 : vector<16x16xf32> to vector<16x16xbf16>
    %c0_1 = arith.constant 0 : index
    %c0_2 = arith.constant 0 : index
    %2 = vector.load %arg2[%c0_1, %c0_2] : memref<16x128xbf16, #tpu.memory_space<vmem>>, vector<16x128xbf16>
    %c0_3 = arith.constant 0 : index
    %c0_4 = arith.constant 0 : index
    %3 = vector.load %arg3[%c0_3, %c0_4] : memref<1x128xf32, #tpu.memory_space<vmem>>, vector<1x128xf32>
    %cst = arith.constant dense<0.000000e+00> : vector<16x128xf32>
    %4 = tpu.matmul %1, %2, %cst {dimension_numbers = #tpu.dot_dimension_numbers<[1], [0], [0], [1], [0, 0, 1, 1], [], []>} : vector<16x16xbf16>, vector<16x128xbf16>, vector<16x128xf32> -> vector<16x128xf32>
    %5 = vector.broadcast %3 : vector<1x128xf32> to vector<16x128xf32>
    %6 = arith.addf %4, %5 : vector<16x128xf32>
    %cst_5 = arith.constant 5.000000e-01 : f32
    %7 = vector.broadcast %cst_5 : f32 to vector<16x128xf32>
    %8 = arith.mulf %7, %6 : vector<16x128xf32>
    %cst_6 = arith.constant 0.707106769 : f32
    %9 = vector.broadcast %cst_6 : f32 to vector<16x128xf32>
    %10 = arith.mulf %6, %9 : vector<16x128xf32>
    %11 = math.erf %10 : vector<16x128xf32>
    %cst_7 = arith.constant 1.000000e+00 : f32
    %12 = vector.broadcast %cst_7 : f32 to vector<16x128xf32>
    %13 = arith.addf %12, %11 : vector<16x128xf32>
    %14 = arith.mulf %8, %13 : vector<16x128xf32>
    %15 = arith.truncf %14 : vector<16x128xf32> to vector<16x128xbf16>
    %c0_8 = arith.constant 0 : index
    %c0_9 = arith.constant 0 : index
    %16 = vector.load %arg4[%c0_8, %c0_9] : memref<128x128xbf16, #tpu.memory_space<vmem>>, vector<128x128xbf16>
    %c0_10 = arith.constant 0 : index
    %c0_11 = arith.constant 0 : index
    %17 = vector.load %arg5[%c0_10, %c0_11] : memref<1x128xf32, #tpu.memory_space<vmem>>, vector<1x128xf32>
    %cst_12 = arith.constant dense<0.000000e+00> : vector<16x128xf32>
    %18 = tpu.matmul %15, %16, %cst_12 {dimension_numbers = #tpu.dot_dimension_numbers<[1], [0], [0], [1], [0, 0, 1, 1], [], []>} : vector<16x128xbf16>, vector<128x128xbf16>, vector<16x128xf32> -> vector<16x128xf32>
    %19 = vector.broadcast %17 : vector<1x128xf32> to vector<16x128xf32>
    %20 = arith.addf %18, %19 : vector<16x128xf32>
    %cst_13 = arith.constant 5.000000e-01 : f32
    %21 = vector.broadcast %cst_13 : f32 to vector<16x128xf32>
    %22 = arith.mulf %21, %20 : vector<16x128xf32>
    %cst_14 = arith.constant 0.707106769 : f32
    %23 = vector.broadcast %cst_14 : f32 to vector<16x128xf32>
    %24 = arith.mulf %20, %23 : vector<16x128xf32>
    %25 = math.erf %24 : vector<16x128xf32>
    %cst_15 = arith.constant 1.000000e+00 : f32
    %26 = vector.broadcast %cst_15 : f32 to vector<16x128xf32>
    %27 = arith.addf %26, %25 : vector<16x128xf32>
    %28 = arith.mulf %22, %27 : vector<16x128xf32>
    %29 = arith.truncf %28 : vector<16x128xf32> to vector<16x128xbf16>
    %c0_16 = arith.constant 0 : index
    %c0_17 = arith.constant 0 : index
    %30 = vector.load %arg6[%c0_16, %c0_17] : memref<128x128xbf16, #tpu.memory_space<vmem>>, vector<128x128xbf16>
    %c0_18 = arith.constant 0 : index
    %c0_19 = arith.constant 0 : index
    %31 = vector.load %arg7[%c0_18, %c0_19] : memref<1x128xf32, #tpu.memory_space<vmem>>, vector<1x128xf32>
    %cst_20 = arith.constant dense<0.000000e+00> : vector<16x128xf32>
    %32 = tpu.matmul %29, %30, %cst_20 {dimension_numbers = #tpu.dot_dimension_numbers<[1], [0], [0], [1], [0, 0, 1, 1], [], []>} : vector<16x128xbf16>, vector<128x128xbf16>, vector<16x128xf32> -> vector<16x128xf32>
    %33 = vector.broadcast %31 : vector<1x128xf32> to vector<16x128xf32>
    %34 = arith.addf %32, %33 : vector<16x128xf32>
    %c0_21 = arith.constant 0 : index
    %c0_22 = arith.constant 0 : index
    %35 = vector.load %arg8[%c0_21, %c0_22] : memref<16x128xf32, #tpu.memory_space<vmem>>, vector<16x128xf32>
    tpu.vector_store %arg8[%c0_21, %c0_22], %34 {strides = array<i32>} : memref<16x128xf32, #tpu.memory_space<vmem>>, vector<16x128xf32>,
    return
  }
  func.func @transform_0(%arg0: i32) -> (i32, i32) {
    %c0_i32 = arith.constant 0 : i32
    %c0_i32_0 = arith.constant 0 : i32
    return %arg0, %c0_i32 : i32, i32
  }
  func.func @transform_1(%arg0: i32) -> (i32, i32) {
    %c0_i32 = arith.constant 0 : i32
    %c0_i32_0 = arith.constant 0 : i32
    %c0_i32_1 = arith.constant 0 : i32
    return %c0_i32, %c0_i32_0 : i32, i32
  }
  func.func @transform_2(%arg0: i32) -> (i32, i32) {
    %c0_i32 = arith.constant 0 : i32
    %c0_i32_0 = arith.constant 0 : i32
    %c0_i32_1 = arith.constant 0 : i32
    return %c0_i32, %c0_i32_0 : i32, i32
  }
  func.func @transform_3(%arg0: i32) -> (i32, i32) {
    %c0_i32 = arith.constant 0 : i32
    %c0_i32_0 = arith.constant 0 : i32
    %c0_i32_1 = arith.constant 0 : i32
    return %c0_i32, %c0_i32_0 : i32, i32
  }
  func.func @transform_4(%arg0: i32) -> (i32, i32) {
    %c0_i32 = arith.constant 0 : i32
    %c0_i32_0 = arith.constant 0 : i32
    %c0_i32_1 = arith.constant 0 : i32
    return %c0_i32, %c0_i32_0 : i32, i32
  }
  func.func @transform_5(%arg0: i32) -> (i32, i32) {
    %c0_i32 = arith.constant 0 : i32
    %c0_i32_0 = arith.constant 0 : i32
    %c0_i32_1 = arith.constant 0 : i32
    return %c0_i32, %c0_i32_0 : i32, i32
  }
  func.func @transform_6(%arg0: i32) -> (i32, i32) {
    %c0_i32 = arith.constant 0 : i32
    %c0_i32_0 = arith.constant 0 : i32
    %c0_i32_1 = arith.constant 0 : i32
    return %c0_i32, %c0_i32_0 : i32, i32
  }
  func.func @transform_7(%arg0: i32) -> (i32, i32) {
    %c0_i32 = arith.constant 0 : i32
    %c0_i32_0 = arith.constant 0 : i32
    return %arg0, %c0_i32 : i32, i32
  }
}

</mosaic_0001>

<bundles_post_ra>
// kernel: tpu_custom_call.1
= control target key start
LH: loop header
LB: loop body
LE: loop exit
PB: predicated region body
PF: predicated region fallthrough
CT: control target
= control target key end

     0   :  { %12 = vsyncpa [#allocation3], 0  ;;  %s754_s0 = inlined_call_operand.hbm [shape: f32[16,16], index: 0, kind: input, shape index: {}]   ;;  %s755_s1 = inlined_call_operand.hbm [shape: bf16[16,128], index: 1, kind: input, shape index: {}]   ;;  %s756_s2 = inlined_call_operand.vmem [shape: f32[1,128], index: 2, kind: input, shape index: {}]   ;;  %s757_s3 = inlined_call_operand.hbm [shape: bf16[128,128], index: 3, kind: input, shape index: {}]   ;;  %s758_s4 = inlined_call_operand.vmem [shape: f32[1,128], index: 4, kind: input, shape index: {}]   ;;  %s759_s5 = inlined_call_operand.hbm [shape: bf16[128,128], index: 5, kind: input, shape index: {}]   ;;  %s760_s6 = inlined_call_operand.vmem [shape: f32[1,128], index: 6, kind: input, shape index: {}]   ;;  %s761_s7 = inlined_call_operand.hbm [shape: f32[16,128], index: 7, kind: output, shape index: {}]  }
   0x1   :  { %13 = vsyncpa [#allocation6], 0 }
   0x2   :  { %14 = vsyncpa [#allocation9], 0 }
   0x3   :  { %15 = vsyncpa [#allocation4], 0  ;;  %s644_s24 = smov [#allocation5]  }
   0x4   :  { %s33_s25 = sshll.u32 %s644_s24, 4  ;;  %s34_s25 = int_to_ptr.vmem [resolvable:$true] %s33_s25 }
   0x5   :  { %s544_s26 = scalar_lea.vmem %s34_s25, 128  ;;  %p549_p1 = scmp.lt.s32.totalorder %s34_s25, %s34_s25 }
   0x6   :  { %p545_p0 = scmp.ne.s32.totalorder %s34_s25, %s544_s26  ;;  %p550_p2 = scmp.lt.s32.totalorder %s544_s26, %s544_s26 }
   0x8   :  { %p551_p3 = por %p550_p2, %p549_p1 }
   0xa   :  { %p552_p4 = pnand %p551_p3, %p545_p0 }
   0xc   :  { %555 = shalt.err (!%p552_p4)
}
   0xd   :  { %s645_s27 = smov 64   ;;  %s646_s28 = smov 4  }
   0xe   :  { %39 = dma.hbm_to_vmem [thread:$0]  %s755_s1, 128, %s34_s25, [#allocation6], %s645_s27, %s645_s27, %s646_s28  }
   0xf   :  { %s647_s8 = smov [#allocation2]  }
  0x10   :  { %s21_s9 = sshll.u32 %s647_s8, 4  ;;  %s22_s9 = int_to_ptr.vmem [resolvable:$true] %s21_s9 }
  0x11   :  { %s564_s10 = scalar_lea.vmem %s22_s9, 256  ;;  %p569_p6 = scmp.lt.s32.totalorder %s22_s9, %s22_s9 }
  0x12   :  { %p565_p5 = scmp.ne.s32.totalorder %s22_s9, %s564_s10  ;;  %p570_p7 = scmp.lt.s32.totalorder %s564_s10, %s564_s10 }
  0x14   :  { %p571_p8 = por %p570_p7, %p569_p6 }
  0x16   :  { %p572_p9 = pnand %p571_p8, %p565_p5 }
  0x18   :  { %575 = shalt.err (!%p572_p9)
}
  0x19   :  { %s648_s11 = smov 128   ;;  %s649_s12 = smov 8  }
  0x1a   :  { %27 = dma.hbm_to_vmem [thread:$0]  %s754_s0, 256, %s22_s9, [#allocation3], %s648_s11, %s648_s11, %s649_s12  }
  0x1b   :  { %s650_s1 = smov [#allocation7]   ;;  %s651_s16 = smov [#allocation8]  }
  0x1c   :  { %s47_s15 = sshll.u32 %s650_s1, 4  ;;  %s61_s17 = sshll.u32 %s651_s16, 4  ;;  %s48_s15 = int_to_ptr.vmem [resolvable:$true] %s47_s15  ;;  %s62_s17 = int_to_ptr.vmem [resolvable:$true] %s61_s17 }
  0x1d   :  { %s584_s18 = scalar_lea.vmem %s48_s15, 1024  ;;  %p589_p11 = scmp.lt.s32.totalorder %s48_s15, %s48_s15 }
  0x1e   :  { %p585_p10 = scmp.ne.s32.totalorder %s48_s15, %s584_s18  ;;  %p590_p12 = scmp.lt.s32.totalorder %s584_s18, %s584_s18 }
  0x20   :  { %p591_p13 = por %p590_p12, %p589_p11 }
  0x22   :  { %p592_p0 = pnand %p591_p13, %p585_p10 }
  0x24   :  { %595 = shalt.err (!%p592_p0)
}
  0x25   :  { %53 = dma.hbm_to_vmem [thread:$0]  %s757_s3, 1024, %s48_s15, [#allocation6], %s645_s27, %s645_s27, %s646_s28  }
  0x26   :  { %s604_s0 = scalar_lea.vmem %s62_s17, 1024  ;;  %p609_p2 = scmp.lt.s32.totalorder %s62_s17, %s62_s17 }
  0x27   :  { %p605_p1 = scmp.ne.s32.totalorder %s62_s17, %s604_s0  ;;  %p610_p3 = scmp.lt.s32.totalorder %s604_s0, %s604_s0 }
  0x29   :  { %p611_p4 = por %p610_p3, %p609_p2 }
  0x2b   :  { %p612_p5 = pnand %p611_p4, %p605_p1 }
  0x2d   :  { %615 = shalt.err (!%p612_p5)
}
  0x2e   :  { %67 = dma.hbm_to_vmem [thread:$0]  %s759_s5, 1024, %s62_s17, [#allocation9], %s645_s27, %s645_s27, %s646_s28  }
  0x2f   :  { %636 = dma.done.wait [#allocation3], 256  }
  0x30   :  { %637 = vsyncadd [#allocation3], 4294967040 }
  0x31   :  { %638 = dma.done.wait [#allocation6], 1152  }
  0x32   :  { %639 = vsyncadd [#allocation6], 4294966144 }
  0x33   :  { %640 = dma.done.wait [#allocation9], 1024  }
  0x34   :  { %641 = vsyncadd [#allocation9], 4294966272  ;;  %v652_v0 = vmov 0.0   ;;  %vm653_vm0 = vmmov 0   ;;  %v511_v1 = vld [vmem:[#allocation5] sm:$0xff]   ;;  %v83_v2 = vld [vmem:[#allocation2] sm:$0xff] }
  0x35   :  { %454 = vmatprep.subr.bf16.mxu0 %v652_v0  ;;  %456 = vmatprep.mubr.msk.bf16.mxu0 %vm653_vm0, %v652_v0  ;;  %v84_v3 = vld [vmem:[#allocation2 + $0x8] sm:$0xff]  ;;  %vm101_vm1 = vcmask 130048   ;;  %v512_v5 = vld [vmem:[#allocation7 + $0x38] sm:$0xff]   ;;  %v514_v7 = vld [vmem:[#allocation7 + $0x28] sm:$0xff]   ;;  %s654_s25 = smov [#allocation10]  }
  0x36   :  { %460 = vmatprep.subr.bf16.mxu1 %v652_v0  ;;  %476 = vmatprep.mubr.msk.bf16.mxu1 %vm653_vm0, %v652_v0  ;;  %v85_v4 = vpack.c.bf16 %v84_v3, %v83_v2  ;;  %v513_v6 = vld [vmem:[#allocation7 + $0x30] sm:$0xff]   ;;  %v515_v8 = vld [vmem:[#allocation7 + $0x20] sm:$0xff]   ;;  %v516_v9 = vld [vmem:[#allocation7 + $0x18] sm:$0xff]   ;;  %s399_s26 = sshll.u32 %s654_s25, 4  ;;  %s400_s26 = int_to_ptr.vmem [resolvable:$true] %s399_s26 }
  0x37   :  { %455 = vmatpush3.bf16.msra.mxu0 %v511_v1  ;;  %461 = vmatpush3.bf16.msra.mxu1 %v512_v5  ;;  %v517_v10 = vld [vmem:[#allocation7 + $0x10] sm:$0xff]   ;;  %v518_v11 = vld [vmem:[#allocation7 + $0x8] sm:$0xff]   ;;  %v519_v12 = vld [vmem:[#allocation7] sm:$0xff]   ;;  %s616_s27 = scalar_lea.vmem %s400_s26, 256  ;;  %p621_p7 = scmp.lt.s32.totalorder %s400_s26, %s400_s26 }
  0x38   :  { %480 = vmatprep.subr.bf16.mxu0 %v652_v0  ;;  %462 = vmatprep.subr.bf16.mxu1 %v652_v0  ;;  %v520_v13 = vld [vmem:[#allocation8 + $0x38] sm:$0xff]   ;;  %v413_v14 = vld [vmem:[%s756_s2] ss:$0 sm:$0xff]  ;;  %v521_v32 = vld [vmem:[#allocation8 + $0x30] sm:$0xff]   ;;  %p617_p6 = scmp.ne.s32.totalorder %s400_s26, %s616_s27  ;;  %p622_p8 = scmp.lt.s32.totalorder %s616_s27, %s616_s27 }
  0x39   :  { %v522_v33 = vld [vmem:[#allocation8 + $0x28] sm:$0xff]   ;;  %v523_v34 = vld [vmem:[#allocation8 + $0x20] sm:$0xff]   ;;  %v524_v35 = vld [vmem:[#allocation8 + $0x18] sm:$0xff]  }
  0x3a   :  { %457 = vmatmul.mubr.msk.bf16.vlgmr.msra.gmra.mxu0 %vm101_vm1, %v85_v4  ;;  %v525_v36 = vld [vmem:[#allocation8 + $0x10] sm:$0xff]   ;;  %v526_v37 = vld [vmem:[#allocation8 + $0x8] sm:$0xff]   ;;  %v527_v38 = vld [vmem:[#allocation8] sm:$0xff]   ;;  %p623_p9 = por %p622_p8, %p621_p7 }
  0x3b   :  { %496 = vmatprep.mubr.msk.bf16.mxu0 %vm653_vm0, %v652_v0  ;;  %463 = vmatpush3.bf16.msra.mxu1 %v513_v6  ;;  %v416_v39 = vld [vmem:[%s758_s4] ss:$0 sm:$0xff] }
  0x3c   :  { %464 = vmatprep.subr.bf16.mxu1 %v652_v0  ;;  %481 = vmatpush3.bf16.msra.mxu0 %v520_v13  ;;  %v425_v57 = vld [vmem:[%s760_s6] ss:$0 sm:$0xff]  ;;  %p624_p10 = pnand %p623_p9, %p617_p6 }
  0x3d   :  { %482 = vmatprep.subr.bf16.mxu0 %v652_v0 }
  0x3f   :  { %465 = vmatpush3.bf16.msra.mxu1 %v514_v7 }
  0x40   :  { %466 = vmatprep.subr.bf16.mxu1 %v652_v0  ;;  %483 = vmatpush3.bf16.msra.mxu0 %v521_v32 }
  0x41   :  { %484 = vmatprep.subr.bf16.mxu0 %v652_v0 }
  0x43   :  { %467 = vmatpush3.bf16.msra.mxu1 %v515_v8 }
  0x44   :  { %468 = vmatprep.subr.bf16.mxu1 %v652_v0  ;;  %485 = vmatpush3.bf16.msra.mxu0 %v522_v33 }
  0x45   :  { %486 = vmatprep.subr.bf16.mxu0 %v652_v0 }
  0x47   :  { %469 = vmatpush3.bf16.msra.mxu1 %v516_v9 }
  0x48   :  { %470 = vmatprep.subr.bf16.mxu1 %v652_v0  ;;  %487 = vmatpush3.bf16.msra.mxu0 %v523_v34 }
  0x49   :  { %488 = vmatprep.subr.bf16.mxu0 %v652_v0 }
  0x4b   :  { %471 = vmatpush3.bf16.msra.mxu1 %v517_v10 }
  0x4c   :  { %472 = vmatprep.subr.bf16.mxu1 %v652_v0  ;;  %489 = vmatpush3.bf16.msra.mxu0 %v524_v35 }
  0x4d   :  { %490 = vmatprep.subr.bf16.mxu0 %v652_v0 }
  0x4f   :  { %473 = vmatpush3.bf16.msra.mxu1 %v518_v11 }
  0x50   :  { %474 = vmatprep.subr.bf16.mxu1 %v652_v0  ;;  %491 = vmatpush3.bf16.msra.mxu0 %v525_v36 }
  0x51   :  { %492 = vmatprep.subr.bf16.mxu0 %v652_v0 }
  0x53   :  { %475 = vmatpush3.bf16.msra.mxu1 %v519_v12 }
  0x54   :  { %493 = vmatpush3.bf16.msra.mxu0 %v526_v37 }
  0x55   :  { %494 = vmatprep.subr.bf16.mxu0 %v652_v0 }
  0x58   :  { %495 = vmatpush3.bf16.msra.mxu0 %v527_v38 }
  0xfa   :  { %v139_v15 = vpop.f32.mrf.mxu0 }
  0xfb   :  { %v140_v16 = vadd.f32 %v413_v14, %v139_v15 }
  0xfc   :  { %v458_v17 = vpop.f32.mrf.mxu0 }
  0xfd   :  { %v148_v18 = vmul.f32 0.70710677, %v140_v16  ;;  %v146_v26 = vmul.f32 0.5, %v140_v16 }
  0xfe   :  { %v142_v19 = vpop.f32.mrf.mxu0 }
  0xff   :  { %528 = verf.f32 %v148_v18  ;;  %v143_v20 = vadd.f32 %v413_v14, %v142_v19 }
 0x100   :  { %v459_v21 = vpop.f32.mrf.mxu0 }
 0x101   :  { %v149_v22 = vmul.f32 0.70710677, %v143_v20  ;;  %v147_v27 = vmul.f32 0.5, %v143_v20 }
 0x103   :  { %530 = verf.f32 %v149_v22 }
 0x10c   :  { %v529_v23 = vpop.eup %528 }
 0x10d   :  { %v152_v24 = vadd.f32 1.0, %v529_v23 }
 0x10f   :  { %v154_v29 = vmul.f32 %v152_v24, %v146_v26 }
 0x110   :  { %v531_v25 = vpop.eup %530 }
 0x111   :  { %v153_v28 = vadd.f32 1.0, %v531_v25 }
 0x113   :  { %v155_v30 = vmul.f32 %v153_v28, %v147_v27 }
 0x115   :  { %v156_v31 = vpack.c.bf16 %v155_v30, %v154_v29 }
 0x117   :  { %477 = vmatmul.mubr.bf16.vlgmr.msra.gmra.mxu1 %v156_v31 }
 0x1d7   :  { %v262_v40 = vpop.f32.mrf.mxu1 }
 0x1d8   :  { %v263_v41 = vadd.f32 %v416_v39, %v262_v40 }
 0x1d9   :  { %v478_v42 = vpop.f32.mrf.mxu1 }
 0x1da   :  { %v271_v43 = vmul.f32 0.70710677, %v263_v41  ;;  %v269_v51 = vmul.f32 0.5, %v263_v41 }
 0x1db   :  { %v265_v44 = vpop.f32.mrf.mxu1 }
 0x1dc   :  { %532 = verf.f32 %v271_v43  ;;  %v266_v45 = vadd.f32 %v416_v39, %v265_v44 }
 0x1dd   :  { %v479_v46 = vpop.f32.mrf.mxu1 }
 0x1de   :  { %v272_v47 = vmul.f32 0.70710677, %v266_v45  ;;  %v270_v52 = vmul.f32 0.5, %v266_v45 }
 0x1e0   :  { %534 = verf.f32 %v272_v47 }
 0x1e9   :  { %v533_v48 = vpop.eup %532 }
 0x1ea   :  { %v275_v49 = vadd.f32 1.0, %v533_v48 }
 0x1ec   :  { %v277_v54 = vmul.f32 %v275_v49, %v269_v51 }
 0x1ed   :  { %v535_v50 = vpop.eup %534 }
 0x1ee   :  { %v276_v53 = vadd.f32 1.0, %v535_v50 }
 0x1f0   :  { %v278_v55 = vmul.f32 %v276_v53, %v270_v52 }
 0x1f2   :  { %v279_v56 = vpack.c.bf16 %v278_v55, %v277_v54 }
 0x1f4   :  { %497 = vmatmul.mubr.bf16.vlgmr.msra.gmra.mxu0 %v279_v56 }
 0x2b4   :  { %v385_v58 = vpop.f32.mrf.mxu0 }
 0x2b5   :  { %v386_v59 = vadd.f32 %v425_v57, %v385_v58 }
 0x2b6   :  { %v498_v60 = vpop.f32.mrf.mxu0 }
 0x2b7   :  { %392 = vst [vmem:[#allocation10] sm:$0xff] %v386_v59 }
 0x2b8   :  { %v388_v61 = vpop.f32.mrf.mxu0 }
 0x2b9   :  { %v389_v62 = vadd.f32 %v425_v57, %v388_v61 }
 0x2ba   :  { %v499_v63 = vpop.f32.mrf.mxu0 }
 0x2bb   :  { %393 = vst [vmem:[#allocation10 + $0x8] sm:$0xff] %v389_v62 }
 0x2bc   :  { %627 = shalt.err (!%p624_p10)
}
 0x2bd   :  { %405 = dma.vmem_to_hbm [thread:$0]  %s400_s26, 256, %s761_s7, [#allocation4], %s648_s11, %s648_s11, %s649_s12  }
 0x2be   :  { %642 = dma.done.wait [#allocation4], 256  }
 0x2bf   :  { %643 = vsyncadd [#allocation4], 4294967040 }
 0x2c0   :  { %409 = vsyncpa [#allocation3], 1 }
 0x2c1   :  { %410 = vsyncpa [#allocation6], 1 }
 0x2c2   :  { %411 = vsyncpa [#allocation9], 1 }
 0x2c3   :  { %412 = vsyncpa [#allocation4], 1 }

// kernel: tpu_custom_call.1
= control target key start
LH: loop header
LB: loop body
LE: loop exit
PB: predicated region body
PF: predicated region fallthrough
CT: control target
= control target key end

     0   :  { %12 = vsyncpa [#allocation3], 0  ;;  %s754_s0 = inlined_call_operand.hbm [shape: f32[16,16], index: 0, kind: input, shape index: {}]   ;;  %s755_s1 = inlined_call_operand.hbm [shape: bf16[16,128], index: 1, kind: input, shape index: {}]   ;;  %s756_s2 = inlined_call_operand.vmem [shape: f32[1,128], index: 2, kind: input, shape index: {}]   ;;  %s757_s3 = inlined_call_operand.hbm [shape: bf16[128,128], index: 3, kind: input, shape index: {}]   ;;  %s758_s4 = inlined_call_operand.vmem [shape: f32[1,128], index: 4, kind: input, shape index: {}]   ;;  %s759_s5 = inlined_call_operand.hbm [shape: bf16[128,128], index: 5, kind: input, shape index: {}]   ;;  %s760_s6 = inlined_call_operand.vmem [shape: f32[1,128], index: 6, kind: input, shape index: {}]   ;;  %s761_s7 = inlined_call_operand.hbm [shape: f32[16,128], index: 7, kind: output, shape index: {}]  }
   0x1   :  { %13 = vsyncpa [#allocation6], 0 }
   0x2   :  { %14 = vsyncpa [#allocation9], 0 }
   0x3   :  { %15 = vsyncpa [#allocation4], 0  ;;  %s644_s24 = smov [#allocation5]  }
   0x4   :  { %s33_s25 = sshll.u32 %s644_s24, 4  ;;  %s34_s25 = int_to_ptr.vmem [resolvable:$true] %s33_s25 }
   0x5   :  { %s544_s26 = scalar_lea.vmem %s34_s25, 128  ;;  %p549_p1 = scmp.lt.s32.totalorder %s34_s25, %s34_s25 }
   0x6   :  { %p545_p0 = scmp.ne.s32.totalorder %s34_s25, %s544_s26  ;;  %p550_p2 = scmp.lt.s32.totalorder %s544_s26, %s544_s26 }
   0x8   :  { %p551_p3 = por %p550_p2, %p549_p1 }
   0xa   :  { %p552_p4 = pnand %p551_p3, %p545_p0 }
   0xc   :  { %555 = shalt.err (!%p552_p4)
}
   0xd   :  { %s645_s27 = smov 64   ;;  %s646_s28 = smov 4  }
   0xe   :  { %39 = dma.hbm_to_vmem [thread:$0]  %s755_s1, 128, %s34_s25, [#allocation6], %s645_s27, %s645_s27, %s646_s28  }
   0xf   :  { %s647_s8 = smov [#allocation2]  }
  0x10   :  { %s21_s9 = sshll.u32 %s647_s8, 4  ;;  %s22_s9 = int_to_ptr.vmem [resolvable:$true] %s21_s9 }
  0x11   :  { %s564_s10 = scalar_lea.vmem %s22_s9, 256  ;;  %p569_p6 = scmp.lt.s32.totalorder %s22_s9, %s22_s9 }
  0x12   :  { %p565_p5 = scmp.ne.s32.totalorder %s22_s9, %s564_s10  ;;  %p570_p7 = scmp.lt.s32.totalorder %s564_s10, %s564_s10 }
  0x14   :  { %p571_p8 = por %p570_p7, %p569_p6 }
  0x16   :  { %p572_p9 = pnand %p571_p8, %p565_p5 }
  0x18   :  { %575 = shalt.err (!%p572_p9)
}
  0x19   :  { %s648_s11 = smov 128   ;;  %s649_s12 = smov 8  }
  0x1a   :  { %27 = dma.hbm_to_vmem [thread:$0]  %s754_s0, 256, %s22_s9, [#allocation3], %s648_s11, %s648_s11, %s649_s12  }
  0x1b   :  { %s650_s1 = smov [#allocation7]   ;;  %s651_s16 = smov [#allocation8]  }
  0x1c   :  { %s47_s15 = sshll.u32 %s650_s1, 4  ;;  %s61_s17 = sshll.u32 %s651_s16, 4  ;;  %s48_s15 = int_to_ptr.vmem [resolvable:$true] %s47_s15  ;;  %s62_s17 = int_to_ptr.vmem [resolvable:$true] %s61_s17 }
  0x1d   :  { %s584_s18 = scalar_lea.vmem %s48_s15, 1024  ;;  %p589_p11 = scmp.lt.s32.totalorder %s48_s15, %s48_s15 }
  0x1e   :  { %p585_p10 = scmp.ne.s32.totalorder %s48_s15, %s584_s18  ;;  %p590_p12 = scmp.lt.s32.totalorder %s584_s18, %s584_s18 }
  0x20   :  { %p591_p13 = por %p590_p12, %p589_p11 }
  0x22   :  { %p592_p0 = pnand %p591_p13, %p585_p10 }
  0x24   :  { %595 = shalt.err (!%p592_p0)
}
  0x25   :  { %53 = dma.hbm_to_vmem [thread:$0]  %s757_s3, 1024, %s48_s15, [#allocation6], %s645_s27, %s645_s27, %s646_s28  }
  0x26   :  { %s604_s0 = scalar_lea.vmem %s62_s17, 1024  ;;  %p609_p2 = scmp.lt.s32.totalorder %s62_s17, %s62_s17 }
  0x27   :  { %p605_p1 = scmp.ne.s32.totalorder %s62_s17, %s604_s0  ;;  %p610_p3 = scmp.lt.s32.totalorder %s604_s0, %s604_s0 }
  0x29   :  { %p611_p4 = por %p610_p3, %p609_p2 }
  0x2b   :  { %p612_p5 = pnand %p611_p4, %p605_p1 }
  0x2d   :  { %615 = shalt.err (!%p612_p5)
}
  0x2e   :  { %67 = dma.hbm_to_vmem [thread:$0]  %s759_s5, 1024, %s62_s17, [#allocation9], %s645_s27, %s645_s27, %s646_s28  }
  0x2f   :  { %636 = dma.done.wait [#allocation3], 256  }
  0x30   :  { %637 = vsyncadd [#allocation3], 4294967040 }
  0x31   :  { %638 = dma.done.wait [#allocation6], 1152  }
  0x32   :  { %639 = vsyncadd [#allocation6], 4294966144 }
  0x33   :  { %640 = dma.done.wait [#allocation9], 1024  }
  0x34   :  { %641 = vsyncadd [#allocation9], 4294966272  ;;  %v652_v0 = vmov 0.0   ;;  %vm653_vm0 = vmmov 0   ;;  %v511_v1 = vld [vmem:[#allocation5] sm:$0xff]   ;;  %v83_v2 = vld [vmem:[#allocation2] sm:$0xff] }
  0x35   :  { %454 = vmatprep.subr.bf16.mxu0 %v652_v0  ;;  %456 = vmatprep.mubr.msk.bf16.mxu0 %vm653_vm0, %v652_v0  ;;  %v84_v3 = vld [vmem:[#allocation2 + $0x8] sm:$0xff]  ;;  %vm101_vm1 = vcmask 130048   ;;  %v512_v5 = vld [vmem:[#allocation7 + $0x38] sm:$0xff]   ;;  %v514_v7 = vld [vmem:[#allocation7 + $0x28] sm:$0xff]   ;;  %s654_s25 = smov [#allocation10]  }
  0x36   :  { %460 = vmatprep.subr.bf16.mxu1 %v652_v0  ;;  %476 = vmatprep.mubr.msk.bf16.mxu1 %vm653_vm0, %v652_v0  ;;  %v85_v4 = vpack.c.bf16 %v84_v3, %v83_v2  ;;  %v513_v6 = vld [vmem:[#allocation7 + $0x30] sm:$0xff]   ;;  %v515_v8 = vld [vmem:[#allocation7 + $0x20] sm:$0xff]   ;;  %v516_v9 = vld [vmem:[#allocation7 + $0x18] sm:$0xff]   ;;  %s399_s26 = sshll.u32 %s654_s25, 4  ;;  %s400_s26 = int_to_ptr.vmem [resolvable:$true] %s399_s26 }
  0x37   :  { %455 = vmatpush3.bf16.msra.mxu0 %v511_v1  ;;  %461 = vmatpush3.bf16.msra.mxu1 %v512_v5  ;;  %v517_v10 = vld [vmem:[#allocation7 + $0x10] sm:$0xff]   ;;  %v518_v11 = vld [vmem:[#allocation7 + $0x8] sm:$0xff]   ;;  %v519_v12 = vld [vmem:[#allocation7] sm:$0xff]   ;;  %s616_s27 = scalar_lea.vmem %s400_s26, 256  ;;  %p621_p7 = scmp.lt.s32.totalorder %s400_s26, %s400_s26 }
  0x38   :  { %480 = vmatprep.subr.bf16.mxu0 %v652_v0  ;;  %462 = vmatprep.subr.bf16.mxu1 %v652_v0  ;;  %v520_v13 = vld [vmem:[#allocation8 + $0x38] sm:$0xff]   ;;  %v413_v14 = vld [vmem:[%s756_s2] ss:$0 sm:$0xff]  ;;  %v521_v32 = vld [vmem:[#allocation8 + $0x30] sm:$0xff]   ;;  %p617_p6 = scmp.ne.s32.totalorder %s400_s26, %s616_s27  ;;  %p622_p8 = scmp.lt.s32.totalorder %s616_s27, %s616_s27 }
  0x39   :  { %v522_v33 = vld [vmem:[#allocation8 + $0x28] sm:$0xff]   ;;  %v523_v34 = vld [vmem:[#allocation8 + $0x20] sm:$0xff]   ;;  %v524_v35 = vld [vmem:[#allocation8 + $0x18] sm:$0xff]  }
  0x3a   :  { %457 = vmatmul.mubr.msk.bf16.vlgmr.msra.gmra.mxu0 %vm101_vm1, %v85_v4  ;;  %v525_v36 = vld [vmem:[#allocation8 + $0x10] sm:$0xff]   ;;  %v526_v37 = vld [vmem:[#allocation8 + $0x8] sm:$0xff]   ;;  %v527_v38 = vld [vmem:[#allocation8] sm:$0xff]   ;;  %p623_p9 = por %p622_p8, %p621_p7 }
  0x3b   :  { %496 = vmatprep.mubr.msk.bf16.mxu0 %vm653_vm0, %v652_v0  ;;  %463 = vmatpush3.bf16.msra.mxu1 %v513_v6  ;;  %v416_v39 = vld [vmem:[%s758_s4] ss:$0 sm:$0xff] }
  0x3c   :  { %464 = vmatprep.subr.bf16.mxu1 %v652_v0  ;;  %481 = vmatpush3.bf16.msra.mxu0 %v520_v13  ;;  %v425_v57 = vld [vmem:[%s760_s6] ss:$0 sm:$0xff]  ;;  %p624_p10 = pnand %p623_p9, %p617_p6 }
  0x3d   :  { %482 = vmatprep.subr.bf16.mxu0 %v652_v0 }
  0x3f   :  { %465 = vmatpush3.bf16.msra.mxu1 %v514_v7 }
  0x40   :  { %466 = vmatprep.subr.bf16.mxu1 %v652_v0  ;;  %483 = vmatpush3.bf16.msra.mxu0 %v521_v32 }
  0x41   :  { %484 = vmatprep.subr.bf16.mxu0 %v652_v0 }
  0x43   :  { %467 = vmatpush3.bf16.msra.mxu1 %v515_v8 }
  0x44   :  { %468 = vmatprep.subr.bf16.mxu1 %v652_v0  ;;  %485 = vmatpush3.bf16.msra.mxu0 %v522_v33 }
  0x45   :  { %486 = vmatprep.subr.bf16.mxu0 %v652_v0 }
  0x47   :  { %469 = vmatpush3.bf16.msra.mxu1 %v516_v9 }
  0x48   :  { %470 = vmatprep.subr.bf16.mxu1 %v652_v0  ;;  %487 = vmatpush3.bf16.msra.mxu0 %v523_v34 }
  0x49   :  { %488 = vmatprep.subr.bf16.mxu0 %v652_v0 }
  0x4b   :  { %471 = vmatpush3.bf16.msra.mxu1 %v517_v10 }
  0x4c   :  { %472 = vmatprep.subr.bf16.mxu1 %v652_v0  ;;  %489 = vmatpush3.bf16.msra.mxu0 %v524_v35 }
  0x4d   :  { %490 = vmatprep.subr.bf16.mxu0 %v652_v0 }
  0x4f   :  { %473 = vmatpush3.bf16.msra.mxu1 %v518_v11 }
  0x50   :  { %474 = vmatprep.subr.bf16.mxu1 %v652_v0  ;;  %491 = vmatpush3.bf16.msra.mxu0 %v525_v36 }
  0x51   :  { %492 = vmatprep.subr.bf16.mxu0 %v652_v0 }
  0x53   :  { %475 = vmatpush3.bf16.msra.mxu1 %v519_v12 }
  0x54   :  { %493 = vmatpush3.bf16.msra.mxu0 %v526_v37 }
  0x55   :  { %494 = vmatprep.subr.bf16.mxu0 %v652_v0 }
  0x58   :  { %495 = vmatpush3.bf16.msra.mxu0 %v527_v38 }
  0xfa   :  { %v139_v15 = vpop.f32.mrf.mxu0 }
  0xfb   :  { %v140_v16 = vadd.f32 %v413_v14, %v139_v15 }
  0xfc   :  { %v458_v17 = vpop.f32.mrf.mxu0 }
  0xfd   :  { %v148_v18 = vmul.f32 0.70710677, %v140_v16  ;;  %v146_v26 = vmul.f32 0.5, %v140_v16 }
  0xfe   :  { %v142_v19 = vpop.f32.mrf.mxu0 }
  0xff   :  { %528 = verf.f32 %v148_v18  ;;  %v143_v20 = vadd.f32 %v413_v14, %v142_v19 }
 0x100   :  { %v459_v21 = vpop.f32.mrf.mxu0 }
 0x101   :  { %v149_v22 = vmul.f32 0.70710677, %v143_v20  ;;  %v147_v27 = vmul.f32 0.5, %v143_v20 }
 0x103   :  { %530 = verf.f32 %v149_v22 }
 0x10c   :  { %v529_v23 = vpop.eup %528 }
 0x10d   :  { %v152_v24 = vadd.f32 1.0, %v529_v23 }
 0x10f   :  { %v154_v29 = vmul.f32 %v152_v24, %v146_v26 }
 0x110   :  { %v531_v25 = vpop.eup %530 }
 0x111   :  { %v153_v28 = vadd.f32 1.0, %v531_v25 }
 0x113   :  { %v155_v30 = vmul.f32 %v153_v28, %v147_v27 }
 0x115   :  { %v156_v31 = vpack.c.bf16 %v155_v30, %v154_v29 }
 0x117   :  { %477 = vmatmul.mubr.bf16.vlgmr.msra.gmra.mxu1 %v156_v31 }
 0x1d7   :  { %v262_v40 = vpop.f32.mrf.mxu1 }
 0x1d8   :  { %v263_v41 = vadd.f32 %v416_v39, %v262_v40 }
 0x1d9   :  { %v478_v42 = vpop.f32.mrf.mxu1 }
 0x1da   :  { %v271_v43 = vmul.f32 0.70710677, %v263_v41  ;;  %v269_v51 = vmul.f32 0.5, %v263_v41 }
 0x1db   :  { %v265_v44 = vpop.f32.mrf.mxu1 }
 0x1dc   :  { %532 = verf.f32 %v271_v43  ;;  %v266_v45 = vadd.f32 %v416_v39, %v265_v44 }
 0x1dd   :  { %v479_v46 = vpop.f32.mrf.mxu1 }
 0x1de   :  { %v272_v47 = vmul.f32 0.70710677, %v266_v45  ;;  %v270_v52 = vmul.f32 0.5, %v266_v45 }
 0x1e0   :  { %534 = verf.f32 %v272_v47 }
 0x1e9   :  { %v533_v48 = vpop.eup %532 }
 0x1ea   :  { %v275_v49 = vadd.f32 1.0, %v533_v48 }
 0x1ec   :  { %v277_v54 = vmul.f32 %v275_v49, %v269_v51 }
 0x1ed   :  { %v535_v50 = vpop.eup %534 }
 0x1ee   :  { %v276_v53 = vadd.f32 1.0, %v535_v50 }
 0x1f0   :  { %v278_v55 = vmul.f32 %v276_v53, %v270_v52 }
 0x1f2   :  { %v279_v56 = vpack.c.bf16 %v278_v55, %v277_v54 }
 0x1f4   :  { %497 = vmatmul.mubr.bf16.vlgmr.msra.gmra.mxu0 %v279_v56 }
 0x2b4   :  { %v385_v58 = vpop.f32.mrf.mxu0 }
 0x2b5   :  { %v386_v59 = vadd.f32 %v425_v57, %v385_v58 }
 0x2b6   :  { %v498_v60 = vpop.f32.mrf.mxu0 }
 0x2b7   :  { %392 = vst [vmem:[#allocation10] sm:$0xff] %v386_v59 }
 0x2b8   :  { %v388_v61 = vpop.f32.mrf.mxu0 }
 0x2b9   :  { %v389_v62 = vadd.f32 %v425_v57, %v388_v61 }
 0x2ba   :  { %v499_v63 = vpop.f32.mrf.mxu0 }
 0x2bb   :  { %393 = vst [vmem:[#allocation10 + $0x8] sm:$0xff] %v389_v62 }
 0x2bc   :  { %627 = shalt.err (!%p624_p10)
}
 0x2bd   :  { %405 = dma.vmem_to_hbm [thread:$0]  %s400_s26, 256, %s761_s7, [#allocation4], %s648_s11, %s648_s11, %s649_s12  }
 0x2be   :  { %642 = dma.done.wait [#allocation4], 256  }
 0x2bf   :  { %643 = vsyncadd [#allocation4], 4294967040 }
 0x2c0   :  { %409 = vsyncpa [#allocation3], 1 }
 0x2c1   :  { %410 = vsyncpa [#allocation6], 1 }
 0x2c2   :  { %411 = vsyncpa [#allocation9], 1 }
 0x2c3   :  { %412 = vsyncpa [#allocation4], 1 }

</bundles_post_ra>
